<compile_context>
chip_gen: v6e
topology: v6e:2x2x1
jax: 0.10.0
libtpu: 0.0.40
codegen_flags: <defaults>
</compile_context>

<pallas_src>
from functools import partial

import jax
import jax.numpy as jnp
from jax.experimental import pallas as pl
from jax.experimental.pallas import tpu as pltpu

EMB = 128  # emb_size, lane-dim friendly


def _round_up(x, m):
    return (x + m - 1) // m * m


def _pad2d(x, rows, cols):
    r, c = x.shape
    return jnp.pad(x, ((0, rows - r), (0, cols - c)))


# ----------------------------- Pallas kernel ------------------------------- #
def _bgc_kernel(scalars_ref, adj_ref, feat_ref, base_ref, vec_ref, out_ref, acc_ref):
    """Tiled MXU matmul with f32 accumulation + fused VPU epilogue.

    Grid = (M_tiles, K_tiles); K is the reduction axis (last, "arbitrary").
    scalars_ref (SMEM, f32[3]) = [s_base, s_vec, s_acc]
    out = s_base * base + s_vec * vec - s_acc * (adj @ feat)
    """
    k = pl.program_id(1)

    @pl.when(k == 0)
    def _():
        acc_ref[...] = jnp.zeros_like(acc_ref)

    acc_ref[...] += jnp.dot(
        adj_ref[...], feat_ref[...], preferred_element_type=jnp.float32
    )

    @pl.when(k == pl.num_programs(1) - 1)
    def _():
        s_base = scalars_ref[0]
        s_vec = scalars_ref[1]
        s_acc = scalars_ref[2]
        out_ref[...] = (
            s_base * base_ref[...] + s_vec * vec_ref[...] - s_acc * acc_ref[...]
        ).astype(out_ref.dtype)


def _bgc_pallas(adj, feat, base, vec, scalars, *, tm, tk):
    Mp, Kp = adj.shape
    Kf, F = feat.shape
    assert Kp == Kf and base.shape == (Mp, F) and vec.shape == (Mp, F)
    assert Mp % tm == 0 and Kp % tk == 0

    grid = (Mp // tm, Kp // tk)
    bytes_accessed = int(
        Mp * Kp * adj.dtype.itemsize          # adjacency stream
        + (Mp // tm) * Kp * F * feat.dtype.itemsize   # aggregated features (re-read per row tile)
        + 3 * Mp * F * 4                      # base, vec, out (f32)
    )
    cost = pl.CostEstimate(
        flops=2 * Mp * Kp * F, transcendentals=0, bytes_accessed=bytes_accessed
    )

    return pl.pallas_call(
        _bgc_kernel,
        out_shape=jax.ShapeDtypeStruct((Mp, F), jnp.float32),
        grid_spec=pltpu.PrefetchScalarGridSpec(
            num_scalar_prefetch=0,
            grid=grid,
            in_specs=[
                pl.BlockSpec(memory_space=pltpu.MemorySpace.SMEM),     # epilogue scalars
                pl.BlockSpec((tm, tk), lambda i, k: (i, k)),           # adjacency tile
                pl.BlockSpec((tk, F), lambda i, k: (k, 0)),            # features to aggregate
                pl.BlockSpec((tm, F), lambda i, k: (i, 0)),            # base features
                pl.BlockSpec((tm, F), lambda i, k: (i, 0)),            # c / b vector term
            ],
            out_specs=pl.BlockSpec((tm, F), lambda i, k: (i, 0)),
            scratch_shapes=[pltpu.VMEM((tm, F), jnp.float32)],
        ),
        compiler_params=pltpu.CompilerParams(
            dimension_semantics=("parallel", "arbitrary"),
            vmem_limit_bytes=32 * 1024 * 1024,  # sized for v7x's 64 MiB physical VMEM
        ),
        cost_estimate=cost,
    )(scalars, adj, feat, base, vec)


# ------------------------------- JAX glue ----------------------------------- #
@partial(jax.jit, static_argnames=("rows", "cols", "tm", "tk"))
def _bipartite_conv(edge_index, edge_weight, feat, base, vec, t_signed, scale,
                    rows, cols, tm=256, tk=512):
    """Dense scatter-add (== COO coalesce) + fused, tiled matmul/update kernel."""
    F = feat.shape[1]

    # Tile sizes: keep full-size tiles for big graphs, shrink (but stay
    # sublane/lane aligned: 32 rows, 256 contraction) for small ones.
    tm_eff = min(tm, _round_up(rows, 32))
    tk_eff = min(tk, _round_up(cols, 256))
    Mp = _round_up(rows, tm_eff)
    Kp = _round_up(cols, tk_eff)

    # Dense coalesced adjacency built directly at padded shape (pads are zero,
    # so the Frobenius norm is unchanged).  The norm is NOT applied here; it is
    # folded into the kernel epilogue coefficients.
    adj = jnp.zeros((Mp, Kp), jnp.float32).at[
        edge_index[:, 0], edge_index[:, 1]
    ].add(edge_weight.astype(jnp.float32))
    fro = jnp.sqrt(jnp.sum(adj * adj))
    inv_fro = jnp.where(fro > 0.0, 1.0 / fro, 0.0)  # guard empty edge list

    # Epilogue coefficients:  out = s_base*base + s_vec*vec - s_acc*acc
    t_signed = jnp.asarray(t_signed, jnp.float32)
    scale = jnp.asarray(scale, jnp.float32)
    scalars = jnp.stack([scale, scale * t_signed, scale * t_signed * inv_fro])

    adj_bf16 = adj.astype(jnp.bfloat16)                       # MXU-friendly operand
    feat_p = _pad2d(feat.astype(jnp.bfloat16), Kp, F)
    base_p = _pad2d(base.astype(jnp.float32), Mp, F)
    vec_p = _pad2d(vec.astype(jnp.float32), Mp, F)

    out = _bgc_pallas(adj_bf16, feat_p, base_p, vec_p, scalars,
                      tm=tm_eff, tk=tk_eff)
    return out[:rows]


class BipartiteGraphConvolutionPallas:
    SCALE = 0.4251202479144762

    def __init__(self, emb_size, right_to_left=False, tm=256, tk=512):
        self.emb_size = emb_size
        self.right_to_left = right_to_left
        # reset_parameters(): self.temp.data.fill_(0.9)
        self.temp = jnp.full((2,), 0.9, dtype=jnp.float32)
        self._tm = tm
        self._tk = tk

    def __call__(self, left_features, right_features_k, edge_index, edge_weight,
                 right_features, c, b):
        n = c.shape[0]
        m = b.shape[0]
        if self.right_to_left:
            # out = left - temp[0] * (b - A(m,n) @ (2*right - right_k))
            rows, cols = m, n
            feat = 2.0 * right_features - right_features_k
            base, vec = left_features, b
            t_signed = -self.temp[0]     # sign folded into temp
            scale = 1.0
        else:
            # out = (right + temp[1] * (c - A(n,m) @ left)) * SCALE
            rows, cols = n, m
            feat = left_features
            base, vec = right_features, c
            t_signed = self.temp[1]
            scale = self.SCALE
        return _bipartite_conv(edge_index, edge_weight, feat, base, vec,
                               t_signed, scale, rows=rows, cols=cols,
                               tm=self._tm, tk=self._tk)


# Pure-JAX f32 reference for correctness checking (mirrors the torch code).
def _reference(left, right_k, edge_index, edge_weight, right, c, b, temp, right_to_left):
    n, m = c.shape[0], b.shape[0]

    def dense_adj(shape):
        a = jnp.zeros(shape, jnp.float32).at[
            edge_index[:, 0], edge_index[:, 1]
        ].add(edge_weight.astype(jnp.float32))
        return a / jnp.sqrt(jnp.sum(a * a))

    if right_to_left:
        adj = dense_adj((m, n))
        conv = adj @ (2.0 * right - right_k)
        return left - temp[0] * (b - conv)
    adj = dense_adj((n, m))
    conv = adj @ left
    return (right + temp[1] * (c - conv)) * 0.4251202479144762


# --------------------------------- main ------------------------------------- #
if __name__ == "__main__":
    key = jax.random.PRNGKey(0)
    m, n, num_edges = 16, 8, 32  # m = #left nodes (len(b)), n = #right nodes (len(c))

    keys = jax.random.split(key, 10)
    left_features = jax.random.normal(keys[0], (m, EMB), jnp.float32)
    right_features = jax.random.normal(keys[1], (n, EMB), jnp.float32)
    right_features_k = jax.random.normal(keys[2], (n, EMB), jnp.float32)
    c = jax.random.normal(keys[3], (n, EMB), jnp.float32)
    b = jax.random.normal(keys[4], (m, EMB), jnp.float32)
    edge_weight = jax.random.uniform(keys[5], (num_edges,), jnp.float32, 0.1, 1.0)

    # right_to_left=False branch expects indices into an (n, m) matrix.
    ei_l2r = jnp.stack(
        [jax.random.randint(keys[6], (num_edges,), 0, n),
         jax.random.randint(keys[7], (num_edges,), 0, m)], axis=1
    ).astype(jnp.int32)
    # right_to_left=True branch expects indices into an (m, n) matrix.
    ei_r2l = jnp.stack(
        [jax.random.randint(keys[8], (num_edges,), 0, m),
         jax.random.randint(keys[9], (num_edges,), 0, n)], axis=1
    ).astype(jnp.int32)

    ok = True
    # bf16 MXU operands vs. f32 reference -> loosened tolerance.
    RTOL, ATOL = 2e-2, 2e-2

    # Branch 1: right_to_left=False (default)
    mod_l2r = BipartiteGraphConvolutionPallas(EMB, right_to_left=False)
    out_l2r = jax.block_until_ready(
        mod_l2r(left_features, right_features_k, ei_l2r, edge_weight,
                right_features, c, b)
    )
    ref_l2r = _reference(left_features, right_features_k, ei_l2r, edge_weight,
                         right_features, c, b, mod_l2r.temp, False)
    ok &= bool(jnp.allclose(out_l2r, ref_l2r, rtol=RTOL, atol=ATOL))

    # Branch 2: right_to_left=True
    mod_r2l = BipartiteGraphConvolutionPallas(EMB, right_to_left=True)
    out_r2l = jax.block_until_ready(
        mod_r2l(left_features, right_features_k, ei_r2l, edge_weight,
                right_features, c, b)
    )
    ref_r2l = _reference(left_features, right_features_k, ei_r2l, edge_weight,
                         right_features, c, b, mod_r2l.temp, True)
    ok &= bool(jnp.allclose(out_r2l, ref_r2l, rtol=RTOL, atol=ATOL))

    if ok:
        print("KERNEL_OK")
    else:
        raise SystemExit("mismatch vs reference")
</pallas_src>

<mosaic_0001>
module attributes {stable_mosaic.version = 11 : i64} {
  func.func private @main(%arg0: i32) attributes {dimension_semantics = [#tpu.dimension_semantics<core_parallel>], iteration_bounds = array<i64: 2>, tpu.core_type = #tpu.core_type<sc_scalar_subcore>, window_params = []} {
    return
  }
}

module attributes {stable_mosaic.version = 11 : i64} {
  func.func private @main(%arg0: i32) attributes {dimension_semantics = [#tpu.dimension_semantics<core_parallel>], iteration_bounds = array<i64: 2>, tpu.core_type = #tpu.core_type<sc_scalar_subcore>, window_params = []} {
    return
  }
}

module attributes {stable_mosaic.version = 11 : i64} {
  func.func @_bgc_kernel(%arg0: i32, %arg1: i32, %arg2: memref<3xf32, #tpu.memory_space<smem>>, %arg3: memref<32x256xbf16, #tpu.memory_space<vmem>>, %arg4: memref<256x128xbf16, #tpu.memory_space<vmem>>, %arg5: memref<32x128xf32, #tpu.memory_space<vmem>>, %arg6: memref<32x128xf32, #tpu.memory_space<vmem>>, %arg7: memref<32x128xf32, #tpu.memory_space<vmem>>, %arg8: memref<32x128xf32, #tpu.memory_space<vmem>>) attributes {dimension_semantics = [#tpu.dimension_semantics<parallel>, #tpu.dimension_semantics<arbitrary>], iteration_bounds = array<i64: 1, 1>, scalar_prefetch = 0 : i64, scratch_operands = 1 : i64, tpu.core_type = #tpu.core_type<tc>, window_params = [{transform_indices = @transform_0, window_bounds = array<i64: 3>}, {transform_indices = @transform_1, window_bounds = array<i64: 32, 256>}, {transform_indices = @transform_2, window_bounds = array<i64: 256, 128>}, {transform_indices = @transform_3, window_bounds = array<i64: 32, 128>}, {transform_indices = @transform_4, window_bounds = array<i64: 32, 128>}, {transform_indices = @transform_5, window_bounds = array<i64: 32, 128>}]} {
    %c0_i32 = arith.constant 0 : i32
    %0 = arith.cmpi eq, %arg1, %c0_i32 : i32
    %1 = arith.extui %0 : i1 to i32
    %c0_i32_0 = arith.constant 0 : i32
    %2 = arith.cmpi ne, %1, %c0_i32_0 : i32
    scf.if %2 {
      %cst_10 = arith.constant 0.000000e+00 : f32
      %12 = vector.broadcast %cst_10 : f32 to vector<32x128xf32>
      %c0_11 = arith.constant 0 : index
      %c0_12 = arith.constant 0 : index
      %13 = vector.load %arg8[%c0_11, %c0_12] : memref<32x128xf32, #tpu.memory_space<vmem>>, vector<32x128xf32>
      tpu.vector_store %arg8[%c0_11, %c0_12], %12 {strides = array<i32>} : memref<32x128xf32, #tpu.memory_space<vmem>>, vector<32x128xf32>,
    } else {
    }
    %c0 = arith.constant 0 : index
    %c0_1 = arith.constant 0 : index
    %3 = vector.load %arg8[%c0, %c0_1] : memref<32x128xf32, #tpu.memory_space<vmem>>, vector<32x128xf32>
    %c0_2 = arith.constant 0 : index
    %c0_3 = arith.constant 0 : index
    %4 = vector.load %arg3[%c0_2, %c0_3] : memref<32x256xbf16, #tpu.memory_space<vmem>>, vector<32x256xbf16>
    %c0_4 = arith.constant 0 : index
    %c0_5 = arith.constant 0 : index
    %5 = vector.load %arg4[%c0_4, %c0_5] : memref<256x128xbf16, #tpu.memory_space<vmem>>, vector<256x128xbf16>
    %cst = arith.constant dense<0.000000e+00> : vector<32x128xf32>
    %6 = tpu.matmul %4, %5, %cst {dimension_numbers = #tpu.dot_dimension_numbers<[1], [0], [0], [1], [0, 0, 1, 1], [], []>} : vector<32x256xbf16>, vector<256x128xbf16>, vector<32x128xf32> -> vector<32x128xf32>
    %7 = arith.addf %3, %6 : vector<32x128xf32>
    %c0_6 = arith.constant 0 : index
    %c0_7 = arith.constant 0 : index
    %8 = vector.load %arg8[%c0_6, %c0_7] : memref<32x128xf32, #tpu.memory_space<vmem>>, vector<32x128xf32>
    tpu.vector_store %arg8[%c0_6, %c0_7], %7 {strides = array<i32>} : memref<32x128xf32, #tpu.memory_space<vmem>>, vector<32x128xf32>,
    %c0_i32_8 = arith.constant 0 : i32
    %9 = arith.cmpi eq, %arg1, %c0_i32_8 : i32
    %10 = arith.extui %9 : i1 to i32
    %c0_i32_9 = arith.constant 0 : i32
    %11 = arith.cmpi ne, %10, %c0_i32_9 : i32
    scf.if %11 {
      %c0_10 = arith.constant 0 : index
      %12 = memref.load %arg2[%c0_10] : memref<3xf32, #tpu.memory_space<smem>>
      %c1 = arith.constant 1 : index
      %13 = memref.load %arg2[%c1] : memref<3xf32, #tpu.memory_space<smem>>
      %c2 = arith.constant 2 : index
      %14 = memref.load %arg2[%c2] : memref<3xf32, #tpu.memory_space<smem>>
      %c0_11 = arith.constant 0 : index
      %c0_12 = arith.constant 0 : index
      %15 = vector.load %arg5[%c0_11, %c0_12] : memref<32x128xf32, #tpu.memory_space<vmem>>, vector<32x128xf32>
      %16 = vector.broadcast %12 : f32 to vector<32x128xf32>
      %17 = arith.mulf %16, %15 : vector<32x128xf32>
      %c0_13 = arith.constant 0 : index
      %c0_14 = arith.constant 0 : index
      %18 = vector.load %arg6[%c0_13, %c0_14] : memref<32x128xf32, #tpu.memory_space<vmem>>, vector<32x128xf32>
      %19 = vector.broadcast %13 : f32 to vector<32x128xf32>
      %20 = arith.mulf %19, %18 : vector<32x128xf32>
      %21 = arith.addf %17, %20 : vector<32x128xf32>
      %c0_15 = arith.constant 0 : index
      %c0_16 = arith.constant 0 : index
      %22 = vector.load %arg8[%c0_15, %c0_16] : memref<32x128xf32, #tpu.memory_space<vmem>>, vector<32x128xf32>
      %23 = vector.broadcast %14 : f32 to vector<32x128xf32>
      %24 = arith.mulf %23, %22 : vector<32x128xf32>
      %25 = arith.subf %21, %24 : vector<32x128xf32>
      %c0_17 = arith.constant 0 : index
      %c0_18 = arith.constant 0 : index
      %26 = vector.load %arg7[%c0_17, %c0_18] : memref<32x128xf32, #tpu.memory_space<vmem>>, vector<32x128xf32>
      tpu.vector_store %arg7[%c0_17, %c0_18], %25 {strides = array<i32>} : memref<32x128xf32, #tpu.memory_space<vmem>>, vector<32x128xf32>,
    } else {
    }
    return
  }
  func.func @transform_0(%arg0: i32, %arg1: i32) -> i32 {
    %c0_i32 = arith.constant 0 : i32
    %c0_i32_0 = arith.constant 0 : i32
    return %c0_i32 : i32
  }
  func.func @transform_1(%arg0: i32, %arg1: i32) -> (i32, i32) {
    %c0_i32 = arith.constant 0 : i32
    return %arg0, %arg1 : i32, i32
  }
  func.func @transform_2(%arg0: i32, %arg1: i32) -> (i32, i32) {
    %c0_i32 = arith.constant 0 : i32
    %c0_i32_0 = arith.constant 0 : i32
    return %arg1, %c0_i32 : i32, i32
  }
  func.func @transform_3(%arg0: i32, %arg1: i32) -> (i32, i32) {
    %c0_i32 = arith.constant 0 : i32
    %c0_i32_0 = arith.constant 0 : i32
    return %arg0, %c0_i32 : i32, i32
  }
  func.func @transform_4(%arg0: i32, %arg1: i32) -> (i32, i32) {
    %c0_i32 = arith.constant 0 : i32
    %c0_i32_0 = arith.constant 0 : i32
    return %arg0, %c0_i32 : i32, i32
  }
  func.func @transform_5(%arg0: i32, %arg1: i32) -> (i32, i32) {
    %c0_i32 = arith.constant 0 : i32
    %c0_i32_0 = arith.constant 0 : i32
    return %arg0, %c0_i32 : i32, i32
  }
}

</mosaic_0001>

<bundles_post_ra>
// kernel: _bipartite_conv.1
= control target key start
LH: loop header
LB: loop body
LE: loop exit
PB: predicated region body
PF: predicated region fallthrough
CT: control target
= control target key end

     0   :  { %10 = vsyncpa [#allocation4], 0  ;;  %s538_s0 = inlined_call_operand.vmem [shape: f32[3], index: 0, kind: input, shape index: {}]   ;;  %s539_s1 = inlined_call_operand.vmem [shape: bf16[32,256], index: 1, kind: input, shape index: {}]   ;;  %s540_s2 = inlined_call_operand.vmem [shape: bf16[256,128], index: 2, kind: input, shape index: {}]   ;;  %s541_s3 = inlined_call_operand.vmem [shape: f32[32,128], index: 3, kind: input, shape index: {}]   ;;  %s542_s4 = inlined_call_operand.vmem [shape: f32[32,128], index: 4, kind: input, shape index: {}]   ;;  %s543_s5 = inlined_call_operand.vmem [shape: f32[32,128], index: 5, kind: output, shape index: {}]  }
   0x1   :  { %s17_s20 = sshll.u32 %s538_s0, 4  ;;  %s18_s20 = int_to_ptr.vmem [resolvable:$true] %s17_s20 }
   0x2   :  { %s394_s21 = scalar_lea.vmem %s18_s20, 16  ;;  %p399_p1 = scmp.lt.s32.totalorder %s18_s20, %s18_s20 }
   0x3   :  { %p395_p0 = scmp.ne.s32.totalorder %s18_s20, %s394_s21  ;;  %p400_p2 = scmp.lt.s32.totalorder %s394_s21, %s394_s21 }
   0x5   :  { %p401_p3 = por %p400_p2, %p399_p1 }
   0x7   :  { %p402_p4 = pnand %p401_p3, %p395_p0 }
   0x9   :  { %405 = shalt.err (!%p402_p4)
}
   0xa   :  { %s408_s22 = smov [#allocation3]  }
   0xb   :  { %20 = dma.vmem_to_smem %s18_s20, 16, %s408_s22, [#allocation4]  }
   0xc   :  { %406 = dma.done.wait [#allocation4], 16  }
   0xd   :  { %407 = vsyncadd [#allocation4], 4294967280 }
   0xe   :  { %32 = sfence }
   0xf   :  { %v372_v0 = vld [vmem:[%s540_s2 + $0x78] sm:$0xff]   ;;  %v374_v2 = vld [vmem:[%s540_s2 + $0x70] sm:$0xff]   ;;  %v376_v4 = vld [vmem:[%s540_s2 + $0x68] sm:$0xff]   ;;  %s258_s11 = sld [smem:[#allocation3]] }
  0x10   :  { %v373_v1 = vld [vmem:[%s540_s2 + $0x38] sm:$0xff]   ;;  %327 = vmatprep.subr.bf16.mxu0 %v372_v0  ;;  %355 = vmatprep.subr.bf16.mxu1 %v372_v0  ;;  %v375_v3 = vld [vmem:[%s540_s2 + $0x30] sm:$0xff]   ;;  %v377_v5 = vld [vmem:[%s540_s2 + $0x28] sm:$0xff]   ;;  %s325_s12 = sld [smem:[#allocation3 + $0x1]] }
  0x11   :  { %328 = vmatpush3.bf16.msra.mxu0 %v373_v1  ;;  %363 = vmatpush3.bf16.msra.mxu1 %v373_v1  ;;  %v378_v6 = vld [vmem:[%s540_s2 + $0x60] sm:$0xff]   ;;  %v380_v8 = vld [vmem:[%s540_s2 + $0x58] sm:$0xff]   ;;  %v382_v10 = vld [vmem:[%s540_s2 + $0x50] sm:$0xff]   ;;  %s326_s13 = sld [smem:[#allocation3 + $0x2]] }
  0x12   :  { %329 = vmatprep.subr.bf16.mxu0 %v374_v2  ;;  %356 = vmatprep.subr.bf16.mxu1 %v374_v2  ;;  %v379_v7 = vld [vmem:[%s540_s2 + $0x20] sm:$0xff]   ;;  %v381_v9 = vld [vmem:[%s540_s2 + $0x18] sm:$0xff]   ;;  %v383_v13 = vld [vmem:[%s540_s2 + $0x10] sm:$0xff]  }
  0x13   :  { %v390_v11 = vld [vmem:[%s539_s1 + $0x4] ss:$8 sps:$4 sm:$0xff]   ;;  %v393_v12 = vld [vmem:[%s539_s1 + $0x14] ss:$8 sps:$4 sm:$0xff]   ;;  %v388_v18 = vld [vmem:[%s539_s1] ss:$8 sps:$4 sm:$0xff]  }
  0x14   :  { %v384_v14 = vld [vmem:[%s540_s2 + $0x48] sm:$0xff]   ;;  %230 = vmatprep.mubr.bf16.mxu0 %v390_v11  ;;  %238 = vmatprep.mubr.bf16.mxu1 %v393_v12  ;;  %v386_v16 = vld [vmem:[%s540_s2 + $0x40] sm:$0xff]   ;;  %v391_v19 = vld [vmem:[%s539_s1 + $0x10] ss:$8 sps:$4 sm:$0xff]  }
  0x15   :  { %330 = vmatpush3.bf16.msra.mxu0 %v375_v3  ;;  %364 = vmatpush3.bf16.msra.mxu1 %v375_v3  ;;  %v385_v15 = vld [vmem:[%s540_s2 + $0x8] sm:$0xff]   ;;  %v387_v17 = vld [vmem:[%s540_s2] sm:$0xff]   ;;  %v265_v21 = vstv %s258_s11  ;;  %v263_v24 = vld [vmem:[%s541_s3 + $0x10] sm:$0xff] }
  0x16   :  { %331 = vmatprep.subr.bf16.mxu0 %v376_v4  ;;  %357 = vmatprep.subr.bf16.mxu1 %v376_v4  ;;  %v261_v20 = vld [vmem:[%s541_s3] sm:$0xff]  ;;  %v274_v23 = vstv %s325_s12  ;;  %v272_v25 = vld [vmem:[%s542_s4 + $0x10] sm:$0xff]  ;;  %v262_v26 = vld [vmem:[%s541_s3 + $0x8] sm:$0xff]  ;;  %v268_v29 = vmul.f32 %v265_v21, %v263_v24 }
  0x17   :  { %v270_v22 = vld [vmem:[%s542_s4] sm:$0xff]  ;;  %v266_v27 = vmul.f32 %v265_v21, %v261_v20  ;;  %v277_v30 = vmul.f32 %v274_v23, %v272_v25  ;;  %v271_v31 = vld [vmem:[%s542_s4 + $0x8] sm:$0xff]  ;;  %v264_v32 = vld [vmem:[%s541_s3 + $0x18] sm:$0xff]  ;;  %v287_v36 = vstv %s326_s13  ;;  %v267_v39 = vmul.f32 %v265_v21, %v262_v26 }
  0x18   :  { %v275_v28 = vmul.f32 %v274_v23, %v270_v22  ;;  %v273_v33 = vld [vmem:[%s542_s4 + $0x18] sm:$0xff]  ;;  %v276_v40 = vmul.f32 %v274_v23, %v271_v31  ;;  %v269_v41 = vmul.f32 %v265_v21, %v264_v32 }
  0x19   :  { %332 = vmatpush3.bf16.msra.mxu0 %v377_v5  ;;  %365 = vmatpush3.bf16.msra.mxu1 %v377_v5  ;;  %v278_v42 = vmul.f32 %v274_v23, %v273_v33  ;;  %v281_v46 = vadd.f32 %v277_v30, %v268_v29 }
  0x1a   :  { %333 = vmatprep.subr.bf16.mxu0 %v378_v6  ;;  %358 = vmatprep.subr.bf16.mxu1 %v378_v6  ;;  %v279_v44 = vadd.f32 %v275_v28, %v266_v27  ;;  %v280_v52 = vadd.f32 %v276_v40, %v267_v39 }
  0x1b   :  { %v282_v54 = vadd.f32 %v278_v42, %v269_v41 }
  0x1d   :  { %334 = vmatpush3.bf16.msra.mxu0 %v379_v7  ;;  %366 = vmatpush3.bf16.msra.mxu1 %v379_v7 }
  0x1e   :  { %335 = vmatprep.subr.bf16.mxu0 %v380_v8  ;;  %359 = vmatprep.subr.bf16.mxu1 %v380_v8 }
  0x21   :  { %336 = vmatpush3.bf16.msra.mxu0 %v381_v9  ;;  %367 = vmatpush3.bf16.msra.mxu1 %v381_v9 }
  0x22   :  { %337 = vmatprep.subr.bf16.mxu0 %v382_v10  ;;  %360 = vmatprep.subr.bf16.mxu1 %v382_v10 }
  0x25   :  { %338 = vmatpush3.bf16.msra.mxu0 %v383_v13  ;;  %368 = vmatpush3.bf16.msra.mxu1 %v383_v13 }
  0x26   :  { %339 = vmatprep.subr.bf16.mxu0 %v384_v14  ;;  %361 = vmatprep.subr.bf16.mxu1 %v384_v14 }
  0x29   :  { %340 = vmatpush3.bf16.msra.mxu0 %v385_v15  ;;  %369 = vmatpush3.bf16.msra.mxu1 %v385_v15 }
  0x2a   :  { %341 = vmatprep.subr.bf16.mxu0 %v386_v16  ;;  %362 = vmatprep.subr.bf16.mxu1 %v386_v16 }
  0x2d   :  { %342 = vmatpush3.bf16.msra.mxu0 %v387_v17  ;;  %370 = vmatpush3.bf16.msra.mxu1 %v387_v17 }
  0x30   :  { %231 = vmatmul.mubr.bf16.vlgmr.msra.gmra.mxu0 %v388_v18  ;;  %239 = vmatmul.mubr.bf16.vlgmr.msra.gmra.mxu1 %v391_v19 }
  0xf0   :  { %v343_v34 = vpop.f32.mrf.mxu0  ;;  %v349_v35 = vpop.f32.mrf.mxu1 }
  0xf2   :  { %v344_v37 = vpop.f32.mrf.mxu0  ;;  %v350_v38 = vpop.f32.mrf.mxu1 }
  0xf3   :  { %v345_v43 = vadd.f32 %v344_v37, %v343_v34  ;;  %v351_v45 = vadd.f32 %v350_v38, %v349_v35 }
  0xf4   :  { %v346_v47 = vpop.f32.mrf.mxu0  ;;  %v352_v48 = vpop.f32.mrf.mxu1 }
  0xf5   :  { %v288_v49 = vmul.f32 %v345_v43, %v287_v36  ;;  %v290_v50 = vmul.f32 %v351_v45, %v287_v36 }
  0xf6   :  { %v347_v51 = vpop.f32.mrf.mxu0  ;;  %v353_v53 = vpop.f32.mrf.mxu1 }
  0xf7   :  { %v292_v55 = vsub.f32 %v279_v44, %v288_v49  ;;  %v294_v56 = vsub.f32 %v281_v46, %v290_v50  ;;  %v348_v57 = vadd.f32 %v347_v51, %v346_v47  ;;  %v354_v58 = vadd.f32 %v353_v53, %v352_v48 }
  0xf9   :  { %296 = vst [vmem:[%s543_s5] sm:$0xff] %v292_v55  ;;  %298 = vst [vmem:[%s543_s5 + $0x10] sm:$0xff] %v294_v56  ;;  %v289_v59 = vmul.f32 %v348_v57, %v287_v36  ;;  %v291_v60 = vmul.f32 %v354_v58, %v287_v36 }
  0xfb   :  { %v293_v61 = vsub.f32 %v280_v52, %v289_v59  ;;  %v295_v62 = vsub.f32 %v282_v54, %v291_v60 }
  0xfd   :  { %297 = vst [vmem:[%s543_s5 + $0x8] sm:$0xff] %v293_v61  ;;  %299 = vst [vmem:[%s543_s5 + $0x18] sm:$0xff] %v295_v62 }
  0xfe   :  { %304 = vsyncpa [#allocation4], 1 }

</bundles_post_ra>
